<compile_context>
chip_gen: v5e
topology: v5e:2x2
jax: 0.10.0
libtpu: 0.0.40
codegen_flags: <defaults>
</compile_context>

<pallas_src>
import jax
import jax.numpy as jnp
from jax.experimental import pallas as pl
from jax.experimental.pallas import tpu as pltpu

C_IN, L_IN = 6, 32
C_MID, K1 = 7, 4
C_OUT, K2 = 8, 2
L1 = L_IN - K1 + 1      # 29
L2 = L1 - K2 + 1        # 28
BN_EPS = 1e-5

CP = 8                  # channels padded to a full sublane group
OUT_LANES = 128         # lane-dense output width


def _model_kernel(x_ref, p_ref, out_ref):
    x = x_ref[...]                       # (8, 32); rows 6..7 are zero
    p = p_ref[...]                       # (16, 32) packed params
    w1 = p[0:CP, :]                      # (8, 32)  conv1 weights, col = k*8 + c_in
    w2 = p[CP:2 * CP, 0:K2 * CP]         # (8, 16)  conv2 (gamma/beta/bias folded)

    # --- Conv1d(6->7, k=4) as ONE MXU matmul on an 8-aligned im2col slab.
    # Each chunk is a full 8-row sublane group (offsets 0, 8, 16, 24).
    x_slab = jnp.concatenate([x[:, k:k + L1] for k in range(K1)], axis=0)   # (32, 29)
    s = jnp.dot(w1, x_slab, preferred_element_type=jnp.float32)             # (8, 29); row 7 == 0

    # --- BatchNorm1d(7), training mode, biased variance, one-pass stats.
    inv_n = jnp.float32(1.0 / L1)
    mean = jnp.sum(s, axis=1, keepdims=True) * inv_n                        # (8, 1)
    e_s2 = jnp.sum(s * s, axis=1, keepdims=True) * inv_n                    # (8, 1)
    var = jnp.maximum(e_s2 - mean * mean, 0.0)                              # clamp cancellation
    s_hat = (s - mean) * jax.lax.rsqrt(var + BN_EPS)                        # (8, 29)

    # Pad channel (row 7) := 1.0 so conv2 bias folds into the matmul for free.
    row = jax.lax.broadcasted_iota(jnp.int32, s_hat.shape, 0)
    s_hat = jnp.where(row == C_MID, jnp.float32(1.0), s_hat)

    # --- Conv1d(7->8, k=2) as ONE MXU matmul; 8-aligned chunks at offsets 0, 8.
    s_slab = jnp.concatenate([s_hat[:, k:k + L2] for k in range(K2)], axis=0)  # (16, 28)
    out = jnp.dot(w2, s_slab, preferred_element_type=jnp.float32)              # (8, 28)

    # Lane-dense unmasked store; wrapper slices [:, :L2].
    out_ref[...] = jnp.pad(out, ((0, 0), (0, OUT_LANES - L2)))


def pack_params(params):
    """Host-side, once-per-parameter-update constant folding + packing.

    Layout of the (16, 32) f32 slab (a single (8,128)-tiled VMEM operand):
      rows 0:8,  cols 0:32  -> conv1 weights, col = k*8 + c_in (pad channels zero)
      rows 8:16, cols 0:16  -> conv2 weights with BN gamma folded, col = k*8 + c_mid;
                               col (k=0, c=7) holds conv2 bias + folded BN beta.
    """
    w1, b1, gamma, beta, w2, b2 = params
    del b1  # exactly cancelled by training-mode BN mean subtraction (forward only)

    # conv1: (7, 6, 4) -> (8, 32)
    w1p = jnp.zeros((CP, K1, CP), jnp.float32)
    w1p = w1p.at[:C_MID, :, :C_IN].set(jnp.transpose(w1, (0, 2, 1)))
    w1p = w1p.reshape(CP, K1 * CP)

    # conv2 with gamma folded: (8, 7, 2) -> (8, 16); bias (+beta fold) in (k=0, c=7)
    w2g = w2 * gamma[None, :, None]
    b2f = b2 + jnp.sum(w2 * beta[None, :, None], axis=(1, 2))
    w2p = jnp.zeros((C_OUT, K2, CP), jnp.float32)
    w2p = w2p.at[:, :, :C_MID].set(jnp.transpose(w2g, (0, 2, 1)))
    w2p = w2p.at[:, 0, C_MID].set(b2f)
    w2p = w2p.reshape(C_OUT, K2 * CP)

    return jnp.concatenate(
        [w1p, jnp.pad(w2p, ((0, 0), (0, K1 * CP - K2 * CP)))], axis=0)   # (16, 32)


@jax.jit
def model_forward(x, packed):
    """x: (1, C_IN, L_IN) f32, packed: (16, 32) f32 -> (1, C_OUT, L2) f32."""
    x8 = jnp.pad(x[0], ((0, CP - C_IN), (0, 0)))   # (8, 32), pad rows explicitly zero
    vmem = pl.BlockSpec(memory_space=pltpu.MemorySpace.VMEM)
    out = pl.pallas_call(
        _model_kernel,
        out_shape=jax.ShapeDtypeStruct((C_OUT, OUT_LANES), jnp.float32),
        in_specs=[vmem, vmem],
        out_specs=vmem,
        cost_estimate=pl.CostEstimate(flops=24000, transcendentals=8,
                                      bytes_accessed=8192),
    )(x8, packed)
    return out[None, :, :L2]                       # (1, 8, 28)


def init_params(key):
    """Deterministic init mimicking PyTorch Conv1d/BatchNorm1d defaults."""
    k1, k2, k3, k4 = jax.random.split(key, 4)
    bound1 = 1.0 / jnp.sqrt(C_IN * K1)
    w1 = jax.random.uniform(k1, (C_MID, C_IN, K1), jnp.float32, -bound1, bound1)
    b1 = jax.random.uniform(k2, (C_MID,), jnp.float32, -bound1, bound1)
    gamma = jnp.ones((C_MID,), jnp.float32)
    beta = jnp.zeros((C_MID,), jnp.float32)
    bound2 = 1.0 / jnp.sqrt(C_MID * K2)
    w2 = jax.random.uniform(k3, (C_OUT, C_MID, K2), jnp.float32, -bound2, bound2)
    b2 = jax.random.uniform(k4, (C_OUT,), jnp.float32, -bound2, bound2)
    return (w1, b1, gamma, beta, w2, b2)


def _reference(x, params):
    """Pure-JAX reference of the ORIGINAL (unfolded) forward pass."""
    w1, b1, gamma, beta, w2, b2 = params
    x2d = x[0]
    s = sum(w1[:, :, k] @ x2d[:, k:k + L1] for k in range(K1)) + b1[:, None]
    mean = s.mean(axis=1, keepdims=True)
    var = ((s - mean) ** 2).mean(axis=1, keepdims=True)       # biased var (training BN)
    s_bn = (s - mean) / jnp.sqrt(var + BN_EPS) * gamma[:, None] + beta[:, None]
    t = sum(w2[:, :, k] @ s_bn[:, k:k + L2] for k in range(K2)) + b2[:, None]
    return t[None]


if __name__ == "__main__":
    key = jax.random.PRNGKey(0)
    kx, kp = jax.random.split(key)
    x = jax.random.normal(kx, (1, C_IN, L_IN), dtype=jnp.float32)
    params = init_params(kp)

    packed = jax.block_until_ready(pack_params(params))   # once per param update

    out = model_forward(x, packed)
    out = jax.block_until_ready(out)
    assert out.shape == (1, C_OUT, L2), out.shape

    ref = _reference(x, params)
    assert jnp.allclose(out, ref, atol=1e-4, rtol=1e-4), float(
        jnp.max(jnp.abs(out - ref)))

    # TODO(synk): BN running-stats side effects are not modeled (forward output only),
    # which is what makes the conv1-bias / gamma-beta / bias constant folding exact.
    print("KERNEL_OK")
</pallas_src>

<mosaic_0001>
module attributes {stable_mosaic.version = 11 : i64} {
  func.func @_model_kernel(%arg0: memref<8x32xf32, #tpu.memory_space<vmem>>, %arg1: memref<16x32xf32, #tpu.memory_space<vmem>>, %arg2: memref<8x128xf32, #tpu.memory_space<vmem>>) attributes {dimension_semantics = [], scalar_prefetch = 0 : i64, scratch_operands = 0 : i64, tpu.core_type = #tpu.core_type<tc>} {
    %c0 = arith.constant 0 : index
    %c0_0 = arith.constant 0 : index
    %0 = vector.load %arg0[%c0, %c0_0] : memref<8x32xf32, #tpu.memory_space<vmem>>, vector<8x32xf32>
    %c0_1 = arith.constant 0 : index
    %c0_2 = arith.constant 0 : index
    %1 = vector.load %arg1[%c0_1, %c0_2] : memref<16x32xf32, #tpu.memory_space<vmem>>, vector<16x32xf32>
    %2 = vector.extract_strided_slice %1 {offsets = [0, 0], sizes = [8, 32], strides = [1, 1]} : vector<16x32xf32> to vector<8x32xf32>
    %3 = vector.extract_strided_slice %1 {offsets = [8, 0], sizes = [8, 16], strides = [1, 1]} : vector<16x32xf32> to vector<8x16xf32>
    %4 = vector.extract_strided_slice %0 {offsets = [0, 0], sizes = [8, 29], strides = [1, 1]} : vector<8x32xf32> to vector<8x29xf32>
    %5 = vector.extract_strided_slice %0 {offsets = [0, 1], sizes = [8, 29], strides = [1, 1]} : vector<8x32xf32> to vector<8x29xf32>
    %6 = vector.extract_strided_slice %0 {offsets = [0, 2], sizes = [8, 29], strides = [1, 1]} : vector<8x32xf32> to vector<8x29xf32>
    %7 = vector.extract_strided_slice %0 {offsets = [0, 3], sizes = [8, 29], strides = [1, 1]} : vector<8x32xf32> to vector<8x29xf32>
    %8 = tpu.concatenate %4, %5, %6, %7 in 0 : vector<8x29xf32>, vector<8x29xf32>, vector<8x29xf32>, vector<8x29xf32> -> vector<32x29xf32>
    %cst = arith.constant dense<0.000000e+00> : vector<8x29xf32>
    %9 = tpu.matmul %2, %8, %cst {dimension_numbers = #tpu.dot_dimension_numbers<[1], [0], [0], [1], [0, 0, 1, 1], [], []>} : vector<8x32xf32>, vector<32x29xf32>, vector<8x29xf32> -> vector<8x29xf32>
    %cst_3 = arith.constant dense<0.000000e+00> : vector<8xf32>
    %10 = vector.multi_reduction <add>, %9, %cst_3 [1] : vector<8x29xf32> to vector<8xf32>
    %11 = vector.shape_cast %10 : vector<8xf32> to vector<8x1xf32>
    %cst_4 = arith.constant 0.0344827585 : f32
    %12 = vector.broadcast %cst_4 : f32 to vector<8x1xf32>
    %13 = arith.mulf %11, %12 : vector<8x1xf32>
    %14 = arith.mulf %9, %9 : vector<8x29xf32>
    %cst_5 = arith.constant dense<0.000000e+00> : vector<8xf32>
    %15 = vector.multi_reduction <add>, %14, %cst_5 [1] : vector<8x29xf32> to vector<8xf32>
    %16 = vector.shape_cast %15 : vector<8xf32> to vector<8x1xf32>
    %cst_6 = arith.constant 0.0344827585 : f32
    %17 = vector.broadcast %cst_6 : f32 to vector<8x1xf32>
    %18 = arith.mulf %16, %17 : vector<8x1xf32>
    %19 = arith.mulf %13, %13 : vector<8x1xf32>
    %20 = arith.subf %18, %19 : vector<8x1xf32>
    %cst_7 = arith.constant 0.000000e+00 : f32
    %21 = vector.broadcast %cst_7 : f32 to vector<8x1xf32>
    %22 = arith.maximumf %20, %21 : vector<8x1xf32>
    %23 = vector.broadcast %13 : vector<8x1xf32> to vector<8x29xf32>
    %24 = arith.subf %9, %23 : vector<8x29xf32>
    %cst_8 = arith.constant 9.99999974E-6 : f32
    %25 = vector.broadcast %cst_8 : f32 to vector<8x1xf32>
    %26 = arith.addf %22, %25 : vector<8x1xf32>
    %27 = math.rsqrt %26 : vector<8x1xf32>
    %28 = vector.broadcast %27 : vector<8x1xf32> to vector<8x29xf32>
    %29 = arith.mulf %24, %28 : vector<8x29xf32>
    %30 = tpu.iota {dimensions = array<i32: 0>} : vector<8x29xi32>
    %c7_i32 = arith.constant 7 : i32
    %31 = vector.broadcast %c7_i32 : i32 to vector<8x29xi32>
    %32 = arith.cmpi eq, %30, %31 : vector<8x29xi32>
    %cst_9 = arith.constant 1.000000e+00 : f32
    %33 = vector.broadcast %cst_9 : f32 to vector<8x29xf32>
    %34 = arith.select %32, %33, %29 : vector<8x29xi1>, vector<8x29xf32>
    %35 = vector.extract_strided_slice %34 {offsets = [0, 0], sizes = [8, 28], strides = [1, 1]} : vector<8x29xf32> to vector<8x28xf32>
    %36 = vector.extract_strided_slice %34 {offsets = [0, 1], sizes = [8, 28], strides = [1, 1]} : vector<8x29xf32> to vector<8x28xf32>
    %37 = tpu.concatenate %35, %36 in 0 : vector<8x28xf32>, vector<8x28xf32> -> vector<16x28xf32>
    %cst_10 = arith.constant dense<0.000000e+00> : vector<8x28xf32>
    %38 = tpu.matmul %3, %37, %cst_10 {dimension_numbers = #tpu.dot_dimension_numbers<[1], [0], [0], [1], [0, 0, 1, 1], [], []>} : vector<8x16xf32>, vector<16x28xf32>, vector<8x28xf32> -> vector<8x28xf32>
    %c0_i32 = arith.constant 0 : i32
    %39 = arith.sitofp %c0_i32 : i32 to f32
    %40 = vector.broadcast %39 : f32 to vector<8x100xf32>
    %41 = tpu.concatenate %38, %40 in 1 : vector<8x28xf32>, vector<8x100xf32> -> vector<8x128xf32>
    %c0_11 = arith.constant 0 : index
    %c0_12 = arith.constant 0 : index
    %42 = vector.load %arg2[%c0_11, %c0_12] : memref<8x128xf32, #tpu.memory_space<vmem>>, vector<8x128xf32>
    tpu.vector_store %arg2[%c0_11, %c0_12], %41 {strides = array<i32>} : memref<8x128xf32, #tpu.memory_space<vmem>>, vector<8x128xf32>,
    return
  }
}

</mosaic_0001>

<bundles_post_ra>
// kernel: model_forward.1
= control target key start
LH: loop header
LB: loop body
LE: loop exit
PB: predicated region body
PF: predicated region fallthrough
CT: control target
= control target key end

     0   :  { %s120_s11 = smov 125   ;;  %s121_s12 = smov 127   ;;  %vm24_vm0 = vcmask 261120   ;;  %vm48_vm1 = vcmask 236544   ;;  %v74_v20 = vlaneseq  ;;  %vm82_vm6 = vcmask 130048   ;;  %s152_s0 = inlined_call_operand.vmem [shape: f32[8,32], index: 0, kind: input, shape index: {}]   ;;  %s153_s1 = inlined_call_operand.vmem [shape: f32[16,32], index: 1, kind: input, shape index: {}]   ;;  %s154_s2 = inlined_call_operand.vmem [shape: f32[8,128], index: 2, kind: output, shape index: {}]  }
   0x1   :  { %v11_v0 = vld [vmem:[%s152_s0] sm:$0xff]  ;;  %s122_s13 = smov 126   ;;  %v13_v30 = vld [vmem:[%s153_s1 + $0x8] sm:$0xff]  ;;  %vm106_vm7 = vcmask 228352  }
   0x2   :  { %21 = vrot.lane.b32.xlu0 %v11_v0, %s120_s11  ;;  %15 = vrot.lane.b32.xlu1 %v11_v0, %s121_s12  ;;  %v12_v4 = vld [vmem:[%s153_s1] sm:$0xff]  ;;  %v75_v23 = vshrl.u32 %v74_v20, 7 }
   0x4   :  { %vm76_vm5 = vcmp.eq.s32.totalorder %v75_v23, 7 }
   0xa   :  { %18 = vrot.lane.b32.xlu0 %v11_v0, %s122_s13 }
  0x74   :  { %v22_v1 = vpop.permute.xlu0 %21  ;;  %v16_v3 = vpop.permute.xlu1 %15 }
  0x75   :  { %40 = vmatpush.msra.mxu0 %v22_v1 }
  0x7c   :  { %v19_v2 = vpop.permute.xlu0 %18 }
  0x7d   :  { %41 = vmatpush.msra.mxu0 %v19_v2 }
  0x7f   :  { %42 = vmatpush.msra.mxu0 %v16_v3 }
  0x81   :  { %43 = vmatpush.msra.mxu0 %v11_v0 }
  0x82   :  { %113 = vmatmul.msk.f32.vlgmr.msra.gmra.mxu0 %vm24_vm0, %v12_v4 }
  0xff   :  { %v45_v5 = vpop.f32.mrf.mxu0 }
 0x100   :  { %v49_v6 = vsel %vm48_vm1, %v45_v5, 0.0  ;;  %v53_v7 = vmul.f32 %v45_v5, %v45_v5 }
 0x101   :  { %50 = vadd.xlane.f32.xlu1 %v49_v6 }
 0x102   :  { %v54_v8 = vsel %vm48_vm1, %v53_v7, 0.0 }
 0x103   :  { %55 = vadd.xlane.f32.xlu2 %v54_v8 }
 0x174   :  { %v51_v9 = vpop.xlane.xlu1 %50 }
 0x175   :  { %v52_v10 = vmul.f32 0.03448276, %v51_v9 }
 0x176   :  { %v56_v11 = vpop.xlane.xlu2 %55 }
 0x177   :  { %v58_v12 = vmul.f32 %v52_v10, %v52_v10  ;;  %v57_v13 = vmul.f32 0.03448276, %v56_v11  ;;  %v61_v25 = vsub.f32 %v45_v5, %v52_v10 }
 0x179   :  { %v59_v14 = vsub.f32 %v57_v13, %v58_v12 }
 0x17b   :  { %v60_v15 = vmax.f32 %v59_v14, 0.0 }
 0x17d   :  { %v62_v16 = vadd.f32 1e-05, %v60_v15 }
 0x17f   :  { %118 = vrsqrt.f32 %v62_v16  ;;  %vm69_vm3 = vweird.f32 %v62_v16 }
 0x185   :  { %v119_v17 = vpop.eup %118 }
 0x186   :  { %v64_v18 = vmul.f32 %v119_v17, %v62_v16  ;;  %vm70_vm2 = vweird.f32 %v119_v17 }
 0x187   :  { %vm71_vm4 = vmor %vm69_vm3, %vm70_vm2 }
 0x188   :  { %v65_v19 = vmul.f32 %v119_v17, %v64_v18 }
 0x18a   :  { %v66_v21 = vmul.f32 0.5, %v65_v19 }
 0x18c   :  { %v67_v22 = vsub.f32 1.5, %v66_v21 }
 0x18e   :  { %v68_v24 = vmul.f32 %v119_v17, %v67_v22 }
 0x190   :  { %v72_v26 = vsel %vm71_vm4, %v119_v17, %v68_v24 }
 0x191   :  { %v73_v27 = vmul.f32 %v72_v26, %v61_v25 }
 0x193   :  { %v77_v28 = vsel %vm76_vm5, 1.0, %v73_v27 }
 0x194   :  { %79 = vrot.lane.b32.xlu2 %v77_v28, %s121_s12 }
 0x1ee   :  { %v80_v29 = vpop.permute.xlu2 %79 }
 0x1ef   :  { %100 = vmatpush.msra.mxu1 %v80_v29 }
 0x1f1   :  { %101 = vmatpush.msra.mxu1 %v77_v28 }
 0x1f2   :  { %114 = vmatmul.msk.f32.vlgmr.msra.gmra.mxu1 %vm82_vm6, %v13_v30 }
 0x26f   :  { %v103_v31 = vpop.f32.mrf.mxu1 }
 0x270   :  { %v107_v32 = vsel %vm106_vm7, %v103_v31, 0.0 }
 0x271   :  { %108 = vst [vmem:[%s154_s2] sm:$0xff] %v107_v32 }

</bundles_post_ra>
